<compile_context>
chip_gen: v5e
topology: v5e:2x2
jax: 0.10.0
libtpu: 0.0.40
codegen_flags: <defaults>
</compile_context>

<pallas_src>
import jax
import jax.numpy as jnp
from jax import lax
from jax.experimental import pallas as pl
from jax.experimental.pallas import tpu as pltpu

LEAKY_SLOPE = 0.02          # nn.LeakyReLU(0.02) in the PyTorch module
LN_EPS = 1e-5               # F.layer_norm default eps
NEG_BIG = -1e9              # bias for padded output lanes so log_softmax ignores them


def _round_up(v, m):
    return ((v + m - 1) // m) * m


def _layernorm_leaky(h):
    mu = jnp.mean(h, axis=-1, keepdims=True)
    var = jnp.mean((h - mu) ** 2, axis=-1, keepdims=True)
    h = (h - mu) * lax.rsqrt(var + LN_EPS)          # rsqrt -> EUP, no VALU divide
    return jnp.where(h > 0, h, LEAKY_SLOPE * h)


def gcn_kernel(x_ref, e2_ref, w1_ref, b1_ref, w2_ref, b2_ref, w3_ref, b3_ref,
               out_ref):
    # x_ref : (gb, N, Fin)  node features of gb graphs (native feature width)
    # e2_ref: (gb, N, N)    adjacency with self loops already added (A + I)
    x = x_ref[...]
    e2 = e2_ref[...]
    gb, n, fin = x.shape
    hdim = w1_ref.shape[1]

    # --- spectral normalization, factored:  diag(r) E2 diag(r) h = r*(E2 @ (r*h))
    #     with r = 1/sqrt(row-degree).  Exactly matches the PyTorch
    #     r_graph @ E2 @ r_graph even for asymmetric adjacency; no transposes,
    #     no diag-matrix matmuls, no N*N elementwise scaling.
    deg = jnp.sum(e2, axis=2, keepdims=True)           # (gb, N, 1) row degrees
    r = lax.rsqrt(deg)                                  # EUP rsqrt

    # --- fc1 + layernorm + leakyrelu, all gb*N node rows fused ----------------
    h1 = jnp.dot(x.reshape(gb * n, fin), w1_ref[...],
                 preferred_element_type=jnp.float32) + b1_ref[...]
    h1 = _layernorm_leaky(h1).reshape(gb, n, hdim)      # (gb, N, H)

    # --- graph mixing: matmul(graphs, hidden).sum(dim=1)/edge_features (E=1) --
    h1 = r * jnp.einsum('bij,bjh->bih', e2, r * h1,
                        preferred_element_type=jnp.float32)   # (gb, N, H)

    # --- fc2 + layernorm + leakyrelu ------------------------------------------
    h2 = jnp.dot(h1.reshape(gb * n, hdim), w2_ref[...],
                 preferred_element_type=jnp.float32) + b2_ref[...]
    h2 = _layernorm_leaky(h2)                           # (gb*N, H)

    # --- max over nodes, fc3, log_softmax (lane-dense padded logits) ----------
    hmax = jnp.max(h2.reshape(gb, n, hdim), axis=1)     # (gb, H)
    logits = jnp.dot(hmax, w3_ref[...],
                     preferred_element_type=jnp.float32) + b3_ref[...]  # (gb, Op)
    m = jnp.max(logits, axis=-1, keepdims=True)
    s = logits - m
    lse = jnp.log(jnp.sum(jnp.exp(s), axis=-1, keepdims=True))
    out_ref[...] = s - lse                              # (gb, Op) lane-dense store


def _pick_gb(B, N, fin, hdim, op):
    """Graphs per grid step.

    Targets gb*N >= 256 matmul rows (fills the MXU M dim on v5e/v6e/v7x) while
    keeping the per-step working set <= ~20 MiB (comfortable even on v7x's
    64 MiB VMEM).  We only keep >= 2 grid steps (so both v7x TensorCores get
    work via the "parallel" grid axis) when each step still has >= 256 rows;
    at that size the ~0.35 us per-step overhead is negligible on single-TC
    chips too.  Otherwise: one big step.
    """
    TARGET_ROWS = 256
    VMEM_BUDGET = 20 * 1024 * 1024

    def fits(gb):
        stream = gb * (N * fin + N * N) * 4 * 2              # x + (A+I), double-buffered
        interm = gb * (N * N + 3 * N * hdim) * 4             # compiler temporaries
        fixed = (fin * hdim + hdim * hdim + hdim * op
                 + 2 * hdim + 2 * op) * 4                     # weights (fetched once)
        out = gb * op * 4 * 2
        return stream + interm + fixed + out <= VMEM_BUDGET

    divs = [d for d in range(1, B + 1) if B % d == 0 and fits(d)]
    if not divs:
        return 1
    two_step = [d for d in divs if B // d >= 2 and d * N >= TARGET_ROWS]
    if two_step:
        return max(two_step)       # largest -> fewest steps (2 when B//2 fits)
    return max(divs)               # small B: single big step


def gcn_forward(x, adj, w1, b1, w2, b2, w3, b3, *, gb=None):
    """x: [B,N,Fin] f32, adj: [B,N,N] f32 (no self loops), weights as (in,out)=W^T."""
    B, N, Fin = x.shape
    H = w1.shape[1]
    O = w3.shape[1]
    Op = _round_up(O, 128)         # lane-dense output store

    # Self loops added once in the wrapper (same HBM bytes as raw adjacency,
    # removes the per-step iota/compare prologue inside the kernel).
    e2 = adj + jnp.eye(N, dtype=adj.dtype)[None]

    # Only the tiny output head is padded; padded logit lanes get a -1e9 bias
    # so log_softmax ignores them and the wrapper slices them off.
    w3_p = jnp.pad(w3, ((0, 0), (0, Op - O)))
    b3_p = jnp.pad(b3, ((0, 0), (0, Op - O)), constant_values=NEG_BIG)

    if gb is None:
        gb = _pick_gb(B, N, Fin, H, Op)
    assert B % gb == 0
    steps = B // gb

    flops = B * (2 * N * Fin * H + 2 * N * N * H + 2 * N * H * H + 2 * H * Op)
    transcendentals = B * (3 * N + Op + 1)   # deg rsqrt + 2x LN rsqrt + exp + log
    bytes_accessed = 4 * (x.size + e2.size + w1.size + w2.size + w3_p.size
                          + b1.size + b2.size + b3_p.size + B * Op)

    out = pl.pallas_call(
        gcn_kernel,
        out_shape=jax.ShapeDtypeStruct((steps, gb, Op), jnp.float32),
        grid_spec=pltpu.PrefetchScalarGridSpec(
            num_scalar_prefetch=0,
            grid=(steps,),
            in_specs=[
                pl.BlockSpec((gb, N, Fin), lambda s: (s, 0, 0)),   # x (native Fin)
                pl.BlockSpec((gb, N, N),   lambda s: (s, 0, 0)),   # A + I
                pl.BlockSpec((Fin, H),     lambda s: (0, 0)),      # W1^T
                pl.BlockSpec((1, H),       lambda s: (0, 0)),      # b1
                pl.BlockSpec((H, H),       lambda s: (0, 0)),      # W2^T
                pl.BlockSpec((1, H),       lambda s: (0, 0)),      # b2
                pl.BlockSpec((H, Op),      lambda s: (0, 0)),      # W3^T (padded)
                pl.BlockSpec((1, Op),      lambda s: (0, 0)),      # b3 (pad = -1e9)
            ],
            out_specs=pl.BlockSpec((None, gb, Op), lambda s: (s, 0, 0)),
        ),
        compiler_params=pltpu.CompilerParams(
            dimension_semantics=("parallel",),
            vmem_limit_bytes=48 * 1024 * 1024),
        cost_estimate=pl.CostEstimate(
            flops=flops, transcendentals=transcendentals,
            bytes_accessed=bytes_accessed),
    )(x, e2, w1, b1, w2, b2, w3_p, b3_p)

    return out.reshape(B, Op)[:, :O]


def reference_forward(x, adj, w1, b1, w2, b2, w3, b3):
    """Pure-JAX mirror of the PyTorch forward, for a correctness check."""
    B, N, _ = x.shape
    eye = jnp.eye(N, dtype=jnp.float32)
    e2 = adj + eye[None]
    deg = jnp.sum(e2, axis=2, keepdims=True)
    r = eye[None] * (1.0 / jnp.sqrt(deg))
    g = r @ e2 @ r

    def ln_lrelu(h):
        mu = jnp.mean(h, axis=-1, keepdims=True)
        var = jnp.mean((h - mu) ** 2, axis=-1, keepdims=True)
        h = (h - mu) / jnp.sqrt(var + LN_EPS)
        return jnp.where(h > 0, h, LEAKY_SLOPE * h)

    h = ln_lrelu(x @ w1 + b1)
    h = jnp.einsum("bij,bjh->bih", g, h)          # edge_features == 1
    h = ln_lrelu(h @ w2 + b2)
    h = jnp.max(h, axis=1)
    logits = h @ w3 + b3
    return jax.nn.log_softmax(logits, axis=-1)


if __name__ == "__main__":
    # NOTE: the PyTorch module's ragged-list batching (stack_edge_graphs / the
    # zero-padding loop) is host-side Python; here the inputs arrive already
    # densely padded as [B,N,Fin] / [B,N,N].
    B, N, FIN, H, OUT = 2, 16, 10, 128, 2

    key = jax.random.PRNGKey(0)
    k_x, k_a, k1, k2, k3, kb1, kb2, kb3 = jax.random.split(key, 8)

    # node features, zero-padding the last 3 nodes of graph 1 (ragged batch)
    x = jax.random.normal(k_x, (B, N, FIN), dtype=jnp.float32)
    x = x.at[1, N - 3:, :].set(0.0)

    # random 0/1 symmetric adjacency, no self loops (wrapper adds them)
    a_raw = (jax.random.uniform(k_a, (B, N, N)) > 0.7).astype(jnp.float32)
    adj = jnp.clip(a_raw + jnp.transpose(a_raw, (0, 2, 1)), 0.0, 1.0)
    adj = adj * (1.0 - jnp.eye(N, dtype=jnp.float32)[None])

    # deterministic synthetic parameters (stored as (in, out) = W^T)
    w1 = 0.1 * jax.random.normal(k1, (FIN, H), dtype=jnp.float32)
    b1 = 0.1 * jax.random.normal(kb1, (1, H), dtype=jnp.float32)
    w2 = 0.1 * jax.random.normal(k2, (H, H), dtype=jnp.float32)
    b2 = 0.1 * jax.random.normal(kb2, (1, H), dtype=jnp.float32)
    w3 = 0.1 * jax.random.normal(k3, (H, OUT), dtype=jnp.float32)
    b3 = 0.1 * jax.random.normal(kb3, (1, OUT), dtype=jnp.float32)

    out = gcn_forward(x, adj, w1, b1, w2, b2, w3, b3)
    out = jax.block_until_ready(out)

    ref = reference_forward(x, adj, w1, b1[0], w2, b2[0], w3, b3[0])
    assert out.shape == (B, OUT)
    assert jnp.allclose(out, ref, atol=2e-3, rtol=2e-3), (out, ref)

    print("KERNEL_OK")
</pallas_src>

<mosaic_0001>
module attributes {stable_mosaic.version = 11 : i64} {
  func.func @gcn_kernel(%arg0: i32, %arg1: memref<2x16x10xf32, #tpu.memory_space<vmem>>, %arg2: memref<2x16x16xf32, #tpu.memory_space<vmem>>, %arg3: memref<10x128xf32, #tpu.memory_space<vmem>>, %arg4: memref<1x128xf32, #tpu.memory_space<vmem>>, %arg5: memref<128x128xf32, #tpu.memory_space<vmem>>, %arg6: memref<1x128xf32, #tpu.memory_space<vmem>>, %arg7: memref<128x128xf32, #tpu.memory_space<vmem>>, %arg8: memref<1x128xf32, #tpu.memory_space<vmem>>, %arg9: memref<1x2x128xf32, #tpu.memory_space<vmem>>) attributes {dimension_semantics = [#tpu.dimension_semantics<parallel>], iteration_bounds = array<i64: 1>, scalar_prefetch = 0 : i64, scratch_operands = 0 : i64, tpu.core_type = #tpu.core_type<tc>, window_params = [{transform_indices = @transform_0, window_bounds = array<i64: 2, 16, 10>}, {transform_indices = @transform_1, window_bounds = array<i64: 2, 16, 16>}, {pipeline_mode = #tpu.pipeline_mode<synchronous>, transform_indices = @transform_2, window_bounds = array<i64: 10, 128>}, {pipeline_mode = #tpu.pipeline_mode<synchronous>, transform_indices = @transform_3, window_bounds = array<i64: 1, 128>}, {pipeline_mode = #tpu.pipeline_mode<synchronous>, transform_indices = @transform_4, window_bounds = array<i64: 128, 128>}, {pipeline_mode = #tpu.pipeline_mode<synchronous>, transform_indices = @transform_5, window_bounds = array<i64: 1, 128>}, {pipeline_mode = #tpu.pipeline_mode<synchronous>, transform_indices = @transform_6, window_bounds = array<i64: 128, 128>}, {pipeline_mode = #tpu.pipeline_mode<synchronous>, transform_indices = @transform_7, window_bounds = array<i64: 1, 128>}, {transform_indices = @transform_8, window_bounds = array<i64: 1, 2, 128>}]} {
    %c0 = arith.constant 0 : index
    %c0_0 = arith.constant 0 : index
    %c0_1 = arith.constant 0 : index
    %0 = vector.load %arg1[%c0, %c0_0, %c0_1] : memref<2x16x10xf32, #tpu.memory_space<vmem>>, vector<2x16x10xf32>
    %c0_2 = arith.constant 0 : index
    %c0_3 = arith.constant 0 : index
    %c0_4 = arith.constant 0 : index
    %1 = vector.load %arg2[%c0_2, %c0_3, %c0_4] : memref<2x16x16xf32, #tpu.memory_space<vmem>>, vector<2x16x16xf32>
    %cst = arith.constant dense<0.000000e+00> : vector<2x16xf32>
    %2 = vector.multi_reduction <add>, %1, %cst [2] : vector<2x16x16xf32> to vector<2x16xf32>
    %3 = vector.shape_cast %2 : vector<2x16xf32> to vector<2x16x1xf32>
    %4 = math.rsqrt %3 : vector<2x16x1xf32>
    %5 = vector.shape_cast %0 : vector<2x16x10xf32> to vector<32x10xf32>
    %c0_5 = arith.constant 0 : index
    %c0_6 = arith.constant 0 : index
    %6 = vector.load %arg3[%c0_5, %c0_6] : memref<10x128xf32, #tpu.memory_space<vmem>>, vector<10x128xf32>
    %cst_7 = arith.constant dense<0.000000e+00> : vector<32x128xf32>
    %7 = tpu.matmul %5, %6, %cst_7 {dimension_numbers = #tpu.dot_dimension_numbers<[1], [0], [0], [1], [0, 0, 1, 1], [], []>} : vector<32x10xf32>, vector<10x128xf32>, vector<32x128xf32> -> vector<32x128xf32>
    %c0_8 = arith.constant 0 : index
    %c0_9 = arith.constant 0 : index
    %8 = vector.load %arg4[%c0_8, %c0_9] : memref<1x128xf32, #tpu.memory_space<vmem>>, vector<1x128xf32>
    %9 = vector.broadcast %8 : vector<1x128xf32> to vector<32x128xf32>
    %10 = arith.addf %7, %9 : vector<32x128xf32>
    %cst_10 = arith.constant dense<0.000000e+00> : vector<32xf32>
    %11 = vector.multi_reduction <add>, %10, %cst_10 [1] : vector<32x128xf32> to vector<32xf32>
    %12 = vector.shape_cast %11 : vector<32xf32> to vector<32x1xf32>
    %cst_11 = arith.constant 1.280000e+02 : f32
    %13 = vector.broadcast %cst_11 : f32 to vector<32x1xf32>
    %14 = arith.divf %12, %13 : vector<32x1xf32>
    %15 = vector.broadcast %14 : vector<32x1xf32> to vector<32x128xf32>
    %16 = arith.subf %10, %15 : vector<32x128xf32>
    %17 = arith.mulf %16, %16 : vector<32x128xf32>
    %cst_12 = arith.constant dense<0.000000e+00> : vector<32xf32>
    %18 = vector.multi_reduction <add>, %17, %cst_12 [1] : vector<32x128xf32> to vector<32xf32>
    %19 = vector.shape_cast %18 : vector<32xf32> to vector<32x1xf32>
    %cst_13 = arith.constant 1.280000e+02 : f32
    %20 = vector.broadcast %cst_13 : f32 to vector<32x1xf32>
    %21 = arith.divf %19, %20 : vector<32x1xf32>
    %22 = vector.broadcast %14 : vector<32x1xf32> to vector<32x128xf32>
    %23 = arith.subf %10, %22 : vector<32x128xf32>
    %cst_14 = arith.constant 9.99999974E-6 : f32
    %24 = vector.broadcast %cst_14 : f32 to vector<32x1xf32>
    %25 = arith.addf %21, %24 : vector<32x1xf32>
    %26 = math.rsqrt %25 : vector<32x1xf32>
    %27 = vector.broadcast %26 : vector<32x1xf32> to vector<32x128xf32>
    %28 = arith.mulf %23, %27 : vector<32x128xf32>
    %cst_15 = arith.constant 0.000000e+00 : f32
    %29 = vector.broadcast %cst_15 : f32 to vector<32x128xf32>
    %30 = arith.cmpf ogt, %28, %29 : vector<32x128xf32>
    %cst_16 = arith.constant 2.000000e-02 : f32
    %31 = vector.broadcast %cst_16 : f32 to vector<32x128xf32>
    %32 = arith.mulf %31, %28 : vector<32x128xf32>
    %33 = arith.select %30, %28, %32 : vector<32x128xi1>, vector<32x128xf32>
    %34 = vector.shape_cast %33 : vector<32x128xf32> to vector<2x16x128xf32>
    %35 = vector.broadcast %4 : vector<2x16x1xf32> to vector<2x16x128xf32>
    %36 = arith.mulf %35, %34 : vector<2x16x128xf32>
    "tpu.trace_start"() <{level = 10 : i32, message = "bij,bjh->bih"}> : () -> ()
    %cst_17 = arith.constant dense<0.000000e+00> : vector<2x16x128xf32>
    %37 = tpu.matmul %1, %36, %cst_17 {dimension_numbers = #tpu.dot_dimension_numbers<[2], [1], [1], [2], [0, 0, 0, 1, 1, 2], [0], [0]>} : vector<2x16x16xf32>, vector<2x16x128xf32>, vector<2x16x128xf32> -> vector<2x16x128xf32>
    "tpu.trace_stop"() : () -> ()
    %38 = vector.broadcast %4 : vector<2x16x1xf32> to vector<2x16x128xf32>
    %39 = arith.mulf %38, %37 : vector<2x16x128xf32>
    %40 = vector.shape_cast %39 : vector<2x16x128xf32> to vector<32x128xf32>
    %c0_18 = arith.constant 0 : index
    %c0_19 = arith.constant 0 : index
    %41 = vector.load %arg5[%c0_18, %c0_19] : memref<128x128xf32, #tpu.memory_space<vmem>>, vector<128x128xf32>
    %cst_20 = arith.constant dense<0.000000e+00> : vector<32x128xf32>
    %42 = tpu.matmul %40, %41, %cst_20 {dimension_numbers = #tpu.dot_dimension_numbers<[1], [0], [0], [1], [0, 0, 1, 1], [], []>} : vector<32x128xf32>, vector<128x128xf32>, vector<32x128xf32> -> vector<32x128xf32>
    %c0_21 = arith.constant 0 : index
    %c0_22 = arith.constant 0 : index
    %43 = vector.load %arg6[%c0_21, %c0_22] : memref<1x128xf32, #tpu.memory_space<vmem>>, vector<1x128xf32>
    %44 = vector.broadcast %43 : vector<1x128xf32> to vector<32x128xf32>
    %45 = arith.addf %42, %44 : vector<32x128xf32>
    %cst_23 = arith.constant dense<0.000000e+00> : vector<32xf32>
    %46 = vector.multi_reduction <add>, %45, %cst_23 [1] : vector<32x128xf32> to vector<32xf32>
    %47 = vector.shape_cast %46 : vector<32xf32> to vector<32x1xf32>
    %cst_24 = arith.constant 1.280000e+02 : f32
    %48 = vector.broadcast %cst_24 : f32 to vector<32x1xf32>
    %49 = arith.divf %47, %48 : vector<32x1xf32>
    %50 = vector.broadcast %49 : vector<32x1xf32> to vector<32x128xf32>
    %51 = arith.subf %45, %50 : vector<32x128xf32>
    %52 = arith.mulf %51, %51 : vector<32x128xf32>
    %cst_25 = arith.constant dense<0.000000e+00> : vector<32xf32>
    %53 = vector.multi_reduction <add>, %52, %cst_25 [1] : vector<32x128xf32> to vector<32xf32>
    %54 = vector.shape_cast %53 : vector<32xf32> to vector<32x1xf32>
    %cst_26 = arith.constant 1.280000e+02 : f32
    %55 = vector.broadcast %cst_26 : f32 to vector<32x1xf32>
    %56 = arith.divf %54, %55 : vector<32x1xf32>
    %57 = vector.broadcast %49 : vector<32x1xf32> to vector<32x128xf32>
    %58 = arith.subf %45, %57 : vector<32x128xf32>
    %cst_27 = arith.constant 9.99999974E-6 : f32
    %59 = vector.broadcast %cst_27 : f32 to vector<32x1xf32>
    %60 = arith.addf %56, %59 : vector<32x1xf32>
    %61 = math.rsqrt %60 : vector<32x1xf32>
    %62 = vector.broadcast %61 : vector<32x1xf32> to vector<32x128xf32>
    %63 = arith.mulf %58, %62 : vector<32x128xf32>
    %cst_28 = arith.constant 0.000000e+00 : f32
    %64 = vector.broadcast %cst_28 : f32 to vector<32x128xf32>
    %65 = arith.cmpf ogt, %63, %64 : vector<32x128xf32>
    %cst_29 = arith.constant 2.000000e-02 : f32
    %66 = vector.broadcast %cst_29 : f32 to vector<32x128xf32>
    %67 = arith.mulf %66, %63 : vector<32x128xf32>
    %68 = arith.select %65, %63, %67 : vector<32x128xi1>, vector<32x128xf32>
    %69 = vector.shape_cast %68 : vector<32x128xf32> to vector<2x16x128xf32>
    %cst_30 = arith.constant dense<0xFF800000> : vector<2x128xf32>
    %70 = vector.multi_reduction <maximumf>, %69, %cst_30 [1] : vector<2x16x128xf32> to vector<2x128xf32>
    %c0_31 = arith.constant 0 : index
    %c0_32 = arith.constant 0 : index
    %71 = vector.load %arg7[%c0_31, %c0_32] : memref<128x128xf32, #tpu.memory_space<vmem>>, vector<128x128xf32>
    %cst_33 = arith.constant dense<0.000000e+00> : vector<2x128xf32>
    %72 = tpu.matmul %70, %71, %cst_33 {dimension_numbers = #tpu.dot_dimension_numbers<[1], [0], [0], [1], [0, 0, 1, 1], [], []>} : vector<2x128xf32>, vector<128x128xf32>, vector<2x128xf32> -> vector<2x128xf32>
    %c0_34 = arith.constant 0 : index
    %c0_35 = arith.constant 0 : index
    %73 = vector.load %arg8[%c0_34, %c0_35] : memref<1x128xf32, #tpu.memory_space<vmem>>, vector<1x128xf32>
    %74 = vector.broadcast %73 : vector<1x128xf32> to vector<2x128xf32>
    %75 = arith.addf %72, %74 : vector<2x128xf32>
    %cst_36 = arith.constant dense<0xFF800000> : vector<2xf32>
    %76 = vector.multi_reduction <maximumf>, %75, %cst_36 [1] : vector<2x128xf32> to vector<2xf32>
    %77 = vector.shape_cast %76 : vector<2xf32> to vector<2x1xf32>
    %78 = vector.broadcast %77 : vector<2x1xf32> to vector<2x128xf32>
    %79 = arith.subf %75, %78 : vector<2x128xf32>
    %80 = math.exp %79 : vector<2x128xf32>
    %cst_37 = arith.constant dense<0.000000e+00> : vector<2xf32>
    %81 = vector.multi_reduction <add>, %80, %cst_37 [1] : vector<2x128xf32> to vector<2xf32>
    %82 = vector.shape_cast %81 : vector<2xf32> to vector<2x1xf32>
    %83 = math.log %82 : vector<2x1xf32>
    %84 = vector.broadcast %83 : vector<2x1xf32> to vector<2x128xf32>
    %85 = arith.subf %79, %84 : vector<2x128xf32>
    %c0_38 = arith.constant 0 : index
    %c0_39 = arith.constant 0 : index
    %c0_40 = arith.constant 0 : index
    %86 = vector.load %arg9[%c0_38, %c0_39, %c0_40] : memref<1x2x128xf32, #tpu.memory_space<vmem>>, vector<1x2x128xf32>
    %87 = vector.shape_cast %86 : vector<1x2x128xf32> to vector<2x128xf32>
    %88 = vector.shape_cast %85 : vector<2x128xf32> to vector<1x2x128xf32>
    tpu.vector_store %arg9[%c0_38, %c0_39, %c0_40], %88 {strides = array<i32>} : memref<1x2x128xf32, #tpu.memory_space<vmem>>, vector<1x2x128xf32>,
    return
  }
  func.func @transform_0(%arg0: i32) -> (i32, i32, i32) {
    %c0_i32 = arith.constant 0 : i32
    %c0_i32_0 = arith.constant 0 : i32
    %c0_i32_1 = arith.constant 0 : i32
    return %arg0, %c0_i32, %c0_i32_0 : i32, i32, i32
  }
  func.func @transform_1(%arg0: i32) -> (i32, i32, i32) {
    %c0_i32 = arith.constant 0 : i32
    %c0_i32_0 = arith.constant 0 : i32
    %c0_i32_1 = arith.constant 0 : i32
    return %arg0, %c0_i32, %c0_i32_0 : i32, i32, i32
  }
  func.func @transform_2(%arg0: i32) -> (i32, i32) {
    %c0_i32 = arith.constant 0 : i32
    %c0_i32_0 = arith.constant 0 : i32
    %c0_i32_1 = arith.constant 0 : i32
    return %c0_i32, %c0_i32_0 : i32, i32
  }
  func.func @transform_3(%arg0: i32) -> (i32, i32) {
    %c0_i32 = arith.constant 0 : i32
    %c0_i32_0 = arith.constant 0 : i32
    %c0_i32_1 = arith.constant 0 : i32
    return %c0_i32, %c0_i32_0 : i32, i32
  }
  func.func @transform_4(%arg0: i32) -> (i32, i32) {
    %c0_i32 = arith.constant 0 : i32
    %c0_i32_0 = arith.constant 0 : i32
    %c0_i32_1 = arith.constant 0 : i32
    return %c0_i32, %c0_i32_0 : i32, i32
  }
  func.func @transform_5(%arg0: i32) -> (i32, i32) {
    %c0_i32 = arith.constant 0 : i32
    %c0_i32_0 = arith.constant 0 : i32
    %c0_i32_1 = arith.constant 0 : i32
    return %c0_i32, %c0_i32_0 : i32, i32
  }
  func.func @transform_6(%arg0: i32) -> (i32, i32) {
    %c0_i32 = arith.constant 0 : i32
    %c0_i32_0 = arith.constant 0 : i32
    %c0_i32_1 = arith.constant 0 : i32
    return %c0_i32, %c0_i32_0 : i32, i32
  }
  func.func @transform_7(%arg0: i32) -> (i32, i32) {
    %c0_i32 = arith.constant 0 : i32
    %c0_i32_0 = arith.constant 0 : i32
    %c0_i32_1 = arith.constant 0 : i32
    return %c0_i32, %c0_i32_0 : i32, i32
  }
  func.func @transform_8(%arg0: i32) -> (i32, i32, i32) {
    %c0_i32 = arith.constant 0 : i32
    %c0_i32_0 = arith.constant 0 : i32
    %c0_i32_1 = arith.constant 0 : i32
    return %arg0, %c0_i32, %c0_i32_0 : i32, i32, i32
  }
}

</mosaic_0001>

<bundles_post_ra>
// kernel: tpu_custom_call.1
= control target key start
LH: loop header
LB: loop body
LE: loop exit
PB: predicated region body
PF: predicated region fallthrough
CT: control target
= control target key end

     0   :  { %13 = vsyncpa [#allocation3], 0  ;;  %s1008_s0 = inlined_call_operand.vmem [shape: f32[2,16,10], index: 0, kind: input, shape index: {}]   ;;  %s1009_s1 = inlined_call_operand.vmem [shape: f32[2,16,16], index: 1, kind: input, shape index: {}]   ;;  %s1010_s2 = inlined_call_operand.vmem [shape: f32[10,128], index: 2, kind: input, shape index: {}]   ;;  %s1011_s3 = inlined_call_operand.vmem [shape: f32[1,128], index: 3, kind: input, shape index: {}]   ;;  %s1012_s4 = inlined_call_operand.hbm [shape: f32[128,128], index: 4, kind: input, shape index: {}]   ;;  %s1013_s5 = inlined_call_operand.vmem [shape: f32[1,128], index: 5, kind: input, shape index: {}]   ;;  %s1014_s6 = inlined_call_operand.hbm [shape: f32[128,128], index: 6, kind: input, shape index: {}]   ;;  %s1015_s7 = inlined_call_operand.vmem [shape: f32[1,128], index: 7, kind: input, shape index: {}]   ;;  %s1016_s8 = inlined_call_operand.hbm [shape: f32[1,2,128], index: 8, kind: output, shape index: {}]  }
   0x1   :  { %14 = vsyncpa [#allocation6], 0 }
   0x2   :  { %15 = vsyncpa [#allocation4], 0  ;;  %s28_s29 = sshll.u32 %s1012_s4, 4  ;;  %s729_s30 = smov [#allocation2]   ;;  %s29_s29 = int_to_ptr.hbm [resolvable:$true] %s28_s29 }
   0x3   :  { %s30_s9 = sshll.u32 %s729_s30, 4  ;;  %s43_s12 = sshll.u32 %s1014_s6, 4  ;;  %s31_s9 = int_to_ptr.vmem [resolvable:$true] %s30_s9  ;;  %s44_s12 = int_to_ptr.hbm [resolvable:$true] %s43_s12 }
   0x4   :  { %s730_s13 = smov 128   ;;  %s731_s14 = smov 8  }
   0x5   :  { %36 = dma.hbm_to_vmem [thread:$0]  %s29_s29, 2048, %s31_s9, [#allocation3], %s730_s13, %s730_s13, %s731_s14  }
   0x6   :  { %s732_s15 = smov [#allocation5]  }
   0x7   :  { %s45_s16 = sshll.u32 %s732_s15, 4  ;;  %s46_s16 = int_to_ptr.vmem [resolvable:$true] %s45_s16 }
   0x8   :  { %51 = dma.hbm_to_vmem [thread:$0]  %s44_s12, 2048, %s46_s16, [#allocation6], %s730_s13, %s730_s13, %s731_s14  }
   0x9   :  { %723 = dma.done.wait [#allocation3], 2048  }
   0xa   :  { %724 = vsyncadd [#allocation3], 4294965248 }
   0xb   :  { %725 = dma.done.wait [#allocation6], 2048  }
   0xc   :  { %726 = vsyncadd [#allocation6], 4294965248  ;;  %vm142_vm0 = vcmask 1041408   ;;  %v124_v0 = vld [vmem:[%s1010_s2 + $0x8] sm:$0x3]  ;;  %v123_v1 = vld [vmem:[%s1010_s2] sm:$0xff] }
   0xd   :  { %571 = vmatpush.msk.msra.mxu0 %vm142_vm0, %v124_v0  ;;  %v62_v2 = vld [vmem:[%s1008_s0] sm:$0xff]  ;;  %vm129_vm1 = vcmask 80896   ;;  %v63_v3 = vld [vmem:[%s1008_s0 + $0x8] sm:$0xff]  ;;  %v64_v4 = vld [vmem:[%s1008_s0 + $0x10] sm:$0xff]  ;;  %v733_v15 = vmov 128.0   ;;  %vm70_vm3 = vcmask 130048  }
   0xe   :  { %v65_v5 = vld [vmem:[%s1008_s0 + $0x18] sm:$0xff]  ;;  %v618_v7 = vld [vmem:[%s1011_s3] ss:$0 sm:$0xff]  ;;  %621 = vrcp.f32 %v733_v15  ;;  %v819_v28 = vld [vmem:[%s1009_s1 + $0x10] sm:$0xff]  ;;  %s734_s14 = smov [#allocation7]   ;;  %s560_s4 = sshll.u32 %s1016_s8, 4  ;;  %s561_s4 = int_to_ptr.hbm [resolvable:$true] %s560_s4 }
   0xf   :  { %161 = vmatpush.msra.mxu0 %v123_v1  ;;  %v77_v30 = vsel %vm70_vm3, %v819_v28, 0.0  ;;  %v831_v34 = vld [vmem:[%s1009_s1 + $0x8] sm:$0xff]  ;;  %v847_v42 = vld [vmem:[%s1009_s1 + $0x18] sm:$0xff]  ;;  %v854_v44 = vld [vmem:[%s1009_s1] sm:$0xff]  ;;  %s558_s15 = sshll.u32 %s734_s14, 4  ;;  %s559_s15 = int_to_ptr.vmem [resolvable:$true] %s558_s15 }
  0x10   :  { %572 = vmatmul.msk.f32.vlgmr.msra.gmra.mxu0 %vm129_vm1, %v62_v2  ;;  %v74_v36 = vsel %vm70_vm3, %v831_v34, 0.0  ;;  %v80_v43 = vsel %vm70_vm3, %v847_v42, 0.0  ;;  %v71_v45 = vsel %vm70_vm3, %v854_v44, 0.0 }
  0x14   :  { %v622_v16 = vpop.eup %621 }
  0x15   :  { %v184_v17 = vmul.f32 128.0, %v622_v16  ;;  %vm188_vm2 = vweird.f32 %v622_v16 }
  0x17   :  { %v185_v18 = vsub.f32 1.0, %v184_v17 }
  0x18   :  { %573 = vmatmul.msk.f32.gmra.mxu0 %vm129_vm1, %v63_v3 }
  0x19   :  { %v186_v19 = vmul.f32 %v622_v16, %v185_v18 }
  0x1b   :  { %v187_v20 = vadd.f32 %v622_v16, %v186_v19 }
  0x1d   :  { %v808_v21 = vsel %vm188_vm2, %v622_v16, %v187_v20 }
  0x20   :  { %574 = vmatmul.msk.f32.gmra.mxu0 %vm129_vm1, %v64_v4 }
  0x28   :  { %575 = vmatmul.msk.f32.gmra.mxu0 %vm129_vm1, %v65_v5 }
  0x8d   :  { %v163_v6 = vpop.f32.mrf.mxu0 }
  0x8e   :  { %v164_v11 = vadd.f32 %v618_v7, %v163_v6 }
  0x95   :  { %v166_v8 = vpop.f32.mrf.mxu0 }
  0x96   :  { %v167_v9 = vadd.f32 %v618_v7, %v166_v8 }
  0x98   :  { %177 = vadd.xlane.f32.xlu1 %v167_v9 }
  0x9d   :  { %v169_v10 = vpop.f32.mrf.mxu0 }
  0x9e   :  { %v170_v14 = vadd.f32 %v618_v7, %v169_v10 }
  0xa0   :  { %175 = vadd.xlane.f32.xlu1 %v164_v11 }
  0xa5   :  { %v172_v12 = vpop.f32.mrf.mxu0 }
  0xa6   :  { %v173_v13 = vadd.f32 %v618_v7, %v172_v12 }
  0xa8   :  { %181 = vadd.xlane.f32.xlu0 %v173_v13 }
  0xb0   :  { %179 = vadd.xlane.f32.xlu0 %v170_v14 }
 0x10b   :  { %v178_v22 = vpop.xlane.xlu1 %177 }
 0x10c   :  { %v191_v23 = vmul.f32 %v808_v21, %v178_v22 }
 0x10e   :  { %v811_v24 = vsub.f32 %v167_v9, %v191_v23 }
 0x110   :  { %v199_v25 = vmul.f32 %v811_v24, %v811_v24 }
 0x112   :  { %204 = vadd.xlane.f32.xlu0 %v199_v25 }
 0x113   :  { %v176_v26 = vpop.xlane.xlu1 %175 }
 0x114   :  { %v190_v27 = vmul.f32 %v808_v21, %v176_v26 }
 0x116   :  { %v821_v29 = vsub.f32 %v164_v11, %v190_v27 }
 0x118   :  { %v198_v31 = vmul.f32 %v821_v29, %v821_v29 }
 0x11a   :  { %202 = vadd.xlane.f32.xlu1 %v198_v31  ;;  %78 = vadd.xlane.f32.xlu0 %v77_v30 }
 0x11b   :  { %v182_v32 = vpop.xlane.xlu0 %181 }
 0x11c   :  { %v193_v33 = vmul.f32 %v808_v21, %v182_v32 }
 0x11e   :  { %v833_v35 = vsub.f32 %v173_v13, %v193_v33 }
 0x120   :  { %v201_v37 = vmul.f32 %v833_v35, %v833_v35 }
 0x122   :  { %208 = vadd.xlane.f32.xlu2 %v201_v37  ;;  %75 = vadd.xlane.f32.xlu1 %v74_v36  ;;  %v889_v37 = vld [vmem:[#allocation2 + $0x78] sm:$0xff] }
 0x123   :  { %v180_v38 = vpop.xlane.xlu0 %179  ;;  %581 = vmatpush.msra.mxu3 %v889_v37 }
 0x124   :  { %v192_v39 = vmul.f32 %v808_v21, %v180_v38  ;;  %v891_v38 = vld [vmem:[#allocation2 + $0x70] sm:$0xff] }
 0x125   :  { %583 = vmatpush.msra.mxu3 %v891_v38 }
 0x126   :  { %v840_v40 = vsub.f32 %v170_v14, %v192_v39 }
 0x128   :  { %v200_v41 = vmul.f32 %v840_v40, %v840_v40 }
 0x12a   :  { %206 = vadd.xlane.f32.xlu2 %v200_v41 }
 0x132   :  { %81 = vadd.xlane.f32.xlu2 %v80_v43 }
 0x13a   :  { %72 = vadd.xlane.f32.xlu2 %v71_v45 }
 0x185   :  { %v205_v46 = vpop.xlane.xlu0 %204 }
 0x186   :  { %v211_v47 = vmul.f32 %v205_v46, %v808_v21 }
 0x188   :  { %v215_v48 = vadd.f32 1e-05, %v211_v47 }
 0x18a   :  { %623 = vrsqrt.f32 %v215_v48  ;;  %vm234_vm5 = vweird.f32 %v215_v48 }
 0x18d   :  { %v203_v49 = vpop.xlane.xlu1 %202  ;;  %v864_v61 = vpop.xlane.xlu0 %78 }
 0x18e   :  { %v210_v50 = vmul.f32 %v203_v49, %v808_v21  ;;  %v899_v49 = vld [vmem:[#allocation2 + $0x68] sm:$0xff] }
 0x18f   :  { %585 = vmatpush.msra.mxu3 %v899_v49 }
 0x190   :  { %v624_v51 = vpop.eup %623  ;;  %v860_v54 = vadd.f32 1e-05, %v210_v50 }
 0x191   :  { %v229_v52 = vmul.f32 %v624_v51, %v215_v48  ;;  %vm235_vm4 = vweird.f32 %v624_v51 }
 0x192   :  { %vm236_vm6 = vmor %vm234_vm5, %vm235_vm4  ;;  %vm224_vm2 = vweird.f32 %v860_v54  ;;  %vm109_vm4 = vweird.f32 %v864_v61 }
 0x193   :  { %v230_v53 = vmul.f32 %v624_v51, %v229_v52 }
 0x195   :  { %v231_v55 = vmul.f32 0.5, %v230_v53  ;;  %v209_v56 = vpop.xlane.xlu2 %208  ;;  %v76_v57 = vpop.xlane.xlu1 %75  ;;  %v904_v53 = vld [vmem:[#allocation2 + $0x60] sm:$0xff] }
 0x196   :  { %v213_v58 = vmul.f32 %v209_v56, %v808_v21  ;;  %625 = vrsqrt.f32 %v76_v57  ;;  %vm99_vm7 = vweird.f32 %v76_v57  ;;  %587 = vmatpush.msra.mxu3 %v904_v53 }
 0x197   :  { %v232_v59 = vsub.f32 1.5, %v231_v55  ;;  %627 = vrsqrt.f32 %v860_v54 }
 0x198   :  { %v217_v60 = vadd.f32 1e-05, %v213_v58 }
 0x199   :  { %v233_v62 = vmul.f32 %v624_v51, %v232_v59  ;;  %v909_v59 = vld [vmem:[#allocation2 + $0x58] sm:$0xff] }
 0x19a   :  { %629 = vrsqrt.f32 %v217_v60  ;;  %vm254_vm12 = vweird.f32 %v217_v60  ;;  %589 = vmatpush.msra.mxu3 %v909_v59 }
 0x19b   :  { %631 = vrsqrt.f32 %v864_v61  ;;  %v237_v0 = vsel %vm236_vm6, %v624_v51, %v233_v62 }
 0x19c   :  { %v626_v63 = vpop.eup %625  ;;  %v259_v6 = vmul.f32 %v237_v0, %v811_v24  ;;  %v920_v0 = vld [vmem:[#allocation2 + $0x50] sm:$0xff] }
 0x19d   :  { %v867_v1 = vpop.eup %627  ;;  %v94_v2 = vmul.f32 %v626_v63, %v76_v57  ;;  %v207_v3 = vpop.xlane.xlu2 %206  ;;  %vm100_vm8 = vweird.f32 %v626_v63  ;;  %591 = vmatpush.msra.mxu3 %v920_v0 }
 0x19e   :  { %v212_v4 = vmul.f32 %v207_v3, %v808_v21  ;;  %v219_v8 = vmul.f32 %v867_v1, %v860_v54  ;;  %v267_v15 = vmul.f32 0.02, %v259_v6  ;;  %vm101_vm9 = vmor %vm99_vm7, %vm100_vm8  ;;  %vm263_vm10 = vcmp.gt.f32.partialorder %v259_v6, 0.0 }
 0x19f   :  { %v95_v5 = vmul.f32 %v626_v63, %v94_v2  ;;  %vm225_vm15 = vweird.f32 %v867_v1 }
 0x1a0   :  { %v630_v7 = vpop.eup %629  ;;  %v216_v9 = vadd.f32 1e-05, %v212_v4  ;;  %v220_v16 = vmul.f32 %v867_v1, %v219_v8  ;;  %v271_v24 = vsel %vm263_vm10, %v259_v6, %v267_v15  ;;  %vm916_vm7 = vmor %vm224_vm2, %vm225_vm15 }
 0x1a1   :  { %v873_v10 = vpop.eup %631  ;;  %v249_v11 = vmul.f32 %v630_v7, %v217_v60  ;;  %v96_v12 = vmul.f32 0.5, %v95_v5  ;;  %vm255_vm11 = vweird.f32 %v630_v7 }
 0x1a2   :  { %633 = vrsqrt.f32 %v216_v9  ;;  %v104_v17 = vmul.f32 %v873_v10, %v864_v61  ;;  %v221_v26 = vmul.f32 0.5, %v220_v16  ;;  %vm885_vm13 = vmor %vm254_vm12, %vm255_vm11  ;;  %vm244_vm1 = vweird.f32 %v216_v9 }
 0x1a3   :  { %v250_v13 = vmul.f32 %v630_v7, %v249_v11  ;;  %v97_v14 = vsub.f32 1.5, %v96_v12  ;;  %vm110_vm5 = vweird.f32 %v873_v10  ;;  %v348_v11 = vld [vmem:[#allocation2 + $0x40] sm:$0xff] }
 0x1a4   :  { %v105_v27 = vmul.f32 %v873_v10, %v104_v17  ;;  %v222_v41 = vsub.f32 1.5, %v221_v26  ;;  %vm111_vm10 = vmor %vm109_vm4, %vm110_vm5  ;;  %v347_v17 = vld [vmem:[#allocation2 + $0x38] sm:$0xff]  ;;  %v344_v26 = vld [vmem:[#allocation2 + $0x20] sm:$0xff] }
 0x1a5   :  { %v251_v18 = vmul.f32 0.5, %v250_v13  ;;  %v878_v19 = vpop.xlane.xlu2 %81  ;;  %v98_v20 = vmul.f32 %v626_v63, %v97_v14 }
 0x1a6   :  { %635 = vrsqrt.f32 %v878_v19  ;;  %v106_v43 = vmul.f32 0.5, %v105_v27  ;;  %v223_v55 = vmul.f32 %v867_v1, %v222_v41  ;;  %vm119_vm11 = vweird.f32 %v878_v19  ;;  %v343_v27 = vld [vmem:[#allocation2 + $0x18] sm:$0xff] }
 0x1a7   :  { %v252_v22 = vsub.f32 1.5, %v251_v18  ;;  %v881_v23 = vsel %vm101_vm9, %v626_v63, %v98_v20  ;;  %v346_v20 = vld [vmem:[#allocation2 + $0x30] sm:$0xff] }
 0x1a8   :  { %v634_v25 = vpop.eup %633  ;;  %v275_v30 = vmul.f32 %v271_v24, %v881_v23  ;;  %v107_v56 = vsub.f32 1.5, %v106_v43  ;;  %v227_v4 = vsel %vm916_vm7, %v867_v1, %v223_v55 }
 0x1a9   :  { %v253_v31 = vmul.f32 %v630_v7, %v252_v22  ;;  %v239_v32 = vmul.f32 %v634_v25, %v216_v9  ;;  %vm245_vm14 = vweird.f32 %v634_v25  ;;  %v258_v61 = vmul.f32 %v227_v4, %v821_v29  ;;  %v509_v4 = vld [vmem:[#allocation5 + $0x70] sm:$0xff] }
 0x1aa   :  { %298 = vmatpush.msra.mxu1 %v275_v30  ;;  %vm246_vm6 = vmor %vm244_vm1, %vm245_vm14  ;;  %v108_v54 = vmul.f32 %v873_v10, %v107_v56 }
 0x1ab   :  { %v240_v36 = vmul.f32 %v634_v25, %v239_v32  ;;  %v257_v45 = vsel %vm885_vm13, %v630_v7, %v253_v31  ;;  %v349_v7 = vld [vmem:[#allocation2 + $0x48] sm:$0xff]  ;;  %vm262_vm15 = vcmp.gt.f32.partialorder %v258_v61, 0.0 }
 0x1ac   :  { %v636_v39 = vpop.eup %635  ;;  %v261_v52 = vmul.f32 %v257_v45, %v833_v35  ;;  %v942_v13 = vsel %vm111_vm10, %v873_v10, %v108_v54  ;;  %593 = vmatpush.msra.mxu3 %v349_v7  ;;  %v345_v10 = vld [vmem:[#allocation2 + $0x28] sm:$0xff] }
 0x1ad   :  { %v241_v46 = vmul.f32 0.5, %v240_v36  ;;  %v114_v47 = vmul.f32 %v636_v39, %v878_v19  ;;  %v897_v48 = vpop.xlane.xlu2 %72  ;;  %vm120_vm8 = vweird.f32 %v636_v39  ;;  %v266_v19 = vmul.f32 0.02, %v258_v61 }
 0x1ae   :  { %637 = vrsqrt.f32 %v897_v48  ;;  %v269_v62 = vmul.f32 0.02, %v261_v52  ;;  %vm265_vm9 = vcmp.gt.f32.partialorder %v261_v52, 0.0  ;;  %vm121_vm12 = vmor %vm119_vm11, %vm120_vm8  ;;  %595 = vmatpush.msra.mxu3 %v348_v11  ;;  %vm89_vm1 = vweird.f32 %v897_v48 }
 0x1af   :  { %v242_v50 = vsub.f32 1.5, %v241_v46  ;;  %v115_v51 = vmul.f32 %v636_v39, %v114_v47  ;;  %v270_v24 = vsel %vm262_vm15, %v258_v61, %v266_v19  ;;  %v500_v19 = vld [vmem:[#allocation5 + $0x28] sm:$0xff] }
 0x1b0   :  { %v273_v9 = vsel %vm265_vm9, %v261_v52, %v269_v62  ;;  %597 = vmatpush.msra.mxu3 %v347_v17 }
 0x1b1   :  { %v243_v57 = vmul.f32 %v634_v25, %v242_v50  ;;  %v116_v58 = vmul.f32 0.5, %v115_v51 }
 0x1b2   :  { %599 = vmatpush.msra.mxu3 %v346_v20 }
 0x1b3   :  { %v117_v60 = vsub.f32 1.5, %v116_v58  ;;  %v247_v63 = vsel %vm246_vm6, %v634_v25, %v243_v57 }
 0x1b4   :  { %v638_v2 = vpop.eup %637  ;;  %v260_v3 = vmul.f32 %v247_v63, %v840_v40  ;;  %601 = vmatpush.msra.mxu3 %v345_v10 }
 0x1b5   :  { %v84_v5 = vmul.f32 %v638_v2, %v897_v48  ;;  %v118_v6 = vmul.f32 %v636_v39, %v117_v60  ;;  %vm90_vm14 = vweird.f32 %v638_v2 }
 0x1b6   :  { %vm264_vm13 = vcmp.gt.f32.partialorder %v260_v3, 0.0  ;;  %v268_v40 = vmul.f32 0.02, %v260_v3  ;;  %vm91_vm2 = vmor %vm89_vm1, %vm90_vm14  ;;  %603 = vmatpush.msra.mxu3 %v344_v26 }
 0x1b7   :  { %v85_v1 = vmul.f32 %v638_v2, %v84_v5  ;;  %v936_v8 = vsel %vm121_vm12, %v636_v39, %v118_v6  ;;  %v619_v39 = vld [vmem:[%s1013_s5] ss:$0 sm:$0xff]  ;;  %v508_v5 = vld [vmem:[#allocation5 + $0x68] sm:$0xff] }
 0x1b8   :  { %v277_v12 = vmul.f32 %v273_v9, %v936_v8  ;;  %v272_v14 = vsel %vm264_vm13, %v260_v3, %v268_v40  ;;  %605 = vmatpush.msra.mxu3 %v343_v27  ;;  %v510_v3 = vld [vmem:[#allocation5 + $0x78] sm:$0xff]  ;;  %v505_v9 = vld [vmem:[#allocation5 + $0x50] sm:$0xff] }
 0x1b9   :  { %v86_v15 = vmul.f32 0.5, %v85_v1  ;;  %v276_v16 = vmul.f32 %v272_v14, %v942_v13  ;;  %520 = vmatpush.msrb.mxu0 %v510_v3  ;;  %v506_v1 = vld [vmem:[#allocation5 + $0x58] sm:$0xff] }
 0x1ba   :  { %327 = vmatpush.msra.mxu2 %v277_v12  ;;  %v502_v14 = vld [vmem:[#allocation5 + $0x38] sm:$0xff] }
 0x1bb   :  { %v87_v18 = vsub.f32 1.5, %v86_v15  ;;  %521 = vmatpush.msrb.mxu0 %v509_v4 }
 0x1bc   :  { %328 = vmatpush.msra.mxu2 %v276_v16  ;;  %v501_v16 = vld [vmem:[#allocation5 + $0x30] sm:$0xff] }
 0x1bd   :  { %578 = vmatmul.msk.f32.vlgmr.msra.gmra.mxu2 %vm70_vm3, %v819_v28  ;;  %v88_v29 = vmul.f32 %v638_v2, %v87_v18  ;;  %v342_v28 = vld [vmem:[#allocation2 + $0x10] sm:$0xff]  ;;  %522 = vmatpush.msrb.mxu0 %v508_v5 }
 0x1be   :  { %580 = vmatpush.msrb.mxu2 %v889_v37  ;;  %607 = vmatpush.msra.mxu3 %v342_v28 }
 0x1bf   :  { %v92_v22 = vsel %vm91_vm2, %v638_v2, %v88_v29 }
 0x1c0   :  { %v274_v25 = vmul.f32 %v270_v24, %v92_v22  ;;  %582 = vmatpush.msrb.mxu2 %v891_v38 }
 0x1c2   :  { %299 = vmatpush.msra.mxu1 %v274_v25  ;;  %584 = vmatpush.msrb.mxu2 %v899_v49 }
 0x1c3   :  { %576 = vmatmul.msk.f32.vlgmr.msra.gmra.mxu1 %vm70_vm3, %v854_v44 }
 0x1c4   :  { %360 = vmatpush.msrb.mxu1 %v889_v37  ;;  %586 = vmatpush.msrb.mxu2 %v904_v53 }
 0x1c5   :  { %579 = vmatmul.msk.f32.gmra.mxu2 %vm70_vm3, %v847_v42  ;;  %v340_v42 = vld [vmem:[#allocation2] sm:$0xff] }
 0x1c6   :  { %361 = vmatpush.msrb.mxu1 %v891_v38  ;;  %588 = vmatpush.msrb.mxu2 %v909_v59 }
 0x1c8   :  { %362 = vmatpush.msrb.mxu1 %v899_v49  ;;  %590 = vmatpush.msrb.mxu2 %v920_v0 }
 0x1ca   :  { %363 = vmatpush.msrb.mxu1 %v904_v53  ;;  %592 = vmatpush.msrb.mxu2 %v349_v7 }
 0x1cb   :  { %577 = vmatmul.msk.f32.gmra.mxu1 %vm70_vm3, %v831_v34  ;;  %v341_v34 = vld [vmem:[#allocation2 + $0x8] sm:$0xff] }
 0x1cc   :  { %364 = vmatpush.msrb.mxu1 %v909_v59  ;;  %594 = vmatpush.msrb.mxu2 %v348_v11 }
 0x1cd   :  { %609 = vmatpush.msra.mxu3 %v341_v34 }
 0x1ce   :  { %365 = vmatpush.msrb.mxu1 %v920_v0  ;;  %596 = vmatpush.msrb.mxu2 %v347_v17 }
 0x1cf   :  { %611 = vmatpush.msra.mxu3 %v340_v42 }
 0x1d0   :  { %366 = vmatpush.msrb.mxu1 %v349_v7  ;;  %598 = vmatpush.msrb.mxu2 %v346_v20  ;;  %v507_v7 = vld [vmem:[#allocation5 + $0x60] sm:$0xff] }
 0x1d1   :  { %523 = vmatpush.msrb.mxu0 %v507_v7 }
 0x1d2   :  { %367 = vmatpush.msrb.mxu1 %v348_v11  ;;  %600 = vmatpush.msrb.mxu2 %v345_v10  ;;  %v504_v11 = vld [vmem:[#allocation5 + $0x48] sm:$0xff] }
 0x1d3   :  { %524 = vmatpush.msrb.mxu0 %v506_v1 }
 0x1d4   :  { %368 = vmatpush.msrb.mxu1 %v347_v17  ;;  %602 = vmatpush.msrb.mxu2 %v344_v26 }
 0x1d5   :  { %525 = vmatpush.msrb.mxu0 %v505_v9 }
 0x1d6   :  { %369 = vmatpush.msrb.mxu1 %v346_v20  ;;  %604 = vmatpush.msrb.mxu2 %v343_v27 }
 0x1d7   :  { %526 = vmatpush.msrb.mxu0 %v504_v11 }
 0x1d8   :  { %370 = vmatpush.msrb.mxu1 %v345_v10  ;;  %606 = vmatpush.msrb.mxu2 %v342_v28 }
 0x1da   :  { %371 = vmatpush.msrb.mxu1 %v344_v26  ;;  %608 = vmatpush.msrb.mxu2 %v341_v34  ;;  %v498_v26 = vld [vmem:[#allocation5 + $0x18] sm:$0xff] }
 0x1dc   :  { %372 = vmatpush.msrb.mxu1 %v343_v27  ;;  %610 = vmatpush.msrb.mxu2 %v340_v42 }
 0x1de   :  { %373 = vmatpush.msrb.mxu1 %v342_v28 }
 0x1e0   :  { %374 = vmatpush.msrb.mxu1 %v341_v34 }
 0x1e2   :  { %375 = vmatpush.msrb.mxu1 %v340_v42 }
 0x240   :  { %v301_v44 = vpop.f32.mrf.mxu1  ;;  %v330_v30 = vpop.f32.mrf.mxu2 }
 0x241   :  { %v336_v31 = vmul.f32 %v301_v44, %v92_v22  ;;  %v338_v32 = vmul.f32 %v330_v30, %v942_v13  ;;  %v503_v13 = vld [vmem:[#allocation5 + $0x40] sm:$0xff]  ;;  %v497_v30 = vld [vmem:[#allocation5 + $0x10] sm:$0xff] }
 0x242   :  { %527 = vmatpush.msrb.mxu0 %v503_v13  ;;  %v499_v22 = vld [vmem:[#allocation5 + $0x20] sm:$0xff] }
 0x243   :  { %376 = vmatmul.f32.vlgmr.msrb.gmra.mxu1 %v336_v31  ;;  %382 = vmatmul.f32.vlgmr.msra.gmra.mxu3 %v338_v32  ;;  %v496_v32 = vld [vmem:[#allocation5 + $0x8] sm:$0xff] }
 0x244   :  { %528 = vmatpush.msrb.mxu0 %v502_v14 }
 0x246   :  { %529 = vmatpush.msrb.mxu0 %v501_v16 }
 0x248   :  { %v304_v33 = vpop.f32.mrf.mxu1  ;;  %v333_v36 = vpop.f32.mrf.mxu2  ;;  %530 = vmatpush.msrb.mxu0 %v500_v19 }
 0x249   :  { %v337_v37 = vmul.f32 %v304_v33, %v881_v23  ;;  %v339_v38 = vmul.f32 %v333_v36, %v936_v8 }
 0x24a   :  { %531 = vmatpush.msrb.mxu0 %v499_v22 }
 0x24b   :  { %379 = vmatmul.f32.vlgmr.msrb.gmra.mxu2 %v337_v37  ;;  %385 = vmatmul.f32.gmra.mxu3 %v339_v38  ;;  %v495_v37 = vld [vmem:[#allocation5] sm:$0xff] }
 0x24c   :  { %532 = vmatpush.msrb.mxu0 %v498_v26 }
 0x24e   :  { %533 = vmatpush.msrb.mxu0 %v497_v30 }
 0x250   :  { %534 = vmatpush.msrb.mxu0 %v496_v32 }
 0x252   :  { %535 = vmatpush.msrb.mxu0 %v495_v37 }
 0x2c0   :  { %v377_v41 = vpop.f32.mrf.mxu1 }
 0x2c1   :  { %v378_v43 = vadd.f32 %v619_v39, %v377_v41 }
 0x2c3   :  { %389 = vadd.xlane.f32.xlu0 %v378_v43 }
 0x2c6   :  { %v383_v45 = vpop.f32.mrf.mxu3 }
 0x2c7   :  { %v384_v46 = vadd.f32 %v619_v39, %v383_v45 }
 0x2c9   :  { %393 = vadd.xlane.f32.xlu2 %v384_v46 }
 0x2ce   :  { %v380_v47 = vpop.f32.mrf.mxu2  ;;  %v386_v48 = vpop.f32.mrf.mxu3 }
 0x2cf   :  { %v381_v49 = vadd.f32 %v619_v39, %v380_v47  ;;  %v387_v50 = vadd.f32 %v619_v39, %v386_v48 }
 0x2d1   :  { %395 = vadd.xlane.f32.xlu0 %v387_v50  ;;  %391 = vadd.xlane.f32.xlu1 %v381_v49 }
 0x336   :  { %v390_v23 = vpop.xlane.xlu0 %389 }
 0x337   :  { %v397_v51 = vmul.f32 %v390_v23, %v808_v21 }
 0x339   :  { %v973_v52 = vsub.f32 %v378_v43, %v397_v51 }
 0x33b   :  { %v405_v53 = vmul.f32 %v973_v52, %v973_v52 }
 0x33c   :  { %v394_v55 = vpop.xlane.xlu2 %393 }
 0x33d   :  { %v399_v56 = vmul.f32 %v394_v55, %v808_v21  ;;  %409 = vadd.xlane.f32.xlu1 %v405_v53 }
 0x33f   :  { %v978_v57 = vsub.f32 %v384_v46, %v399_v56 }
 0x341   :  { %v407_v58 = vmul.f32 %v978_v57, %v978_v57 }
 0x343   :  { %413 = vadd.xlane.f32.xlu0 %v407_v58 }
 0x344   :  { %v396_v59 = vpop.xlane.xlu0 %395  ;;  %v392_v35 = vpop.xlane.xlu1 %391 }
 0x345   :  { %v400_v60 = vmul.f32 %v396_v59, %v808_v21  ;;  %v398_v62 = vmul.f32 %v392_v35, %v808_v21 }
 0x347   :  { %v984_v63 = vsub.f32 %v387_v50, %v400_v60  ;;  %v986_v0 = vsub.f32 %v381_v49, %v398_v62 }
 0x349   :  { %v408_v2 = vmul.f32 %v984_v63, %v984_v63  ;;  %v406_v54 = vmul.f32 %v986_v0, %v986_v0 }
 0x34b   :  { %415 = vadd.xlane.f32.xlu1 %v408_v2  ;;  %411 = vadd.xlane.f32.xlu2 %v406_v54 }
 0x3b0   :  { %v410_v6 = vpop.xlane.xlu1 %409 }
 0x3b1   :  { %v417_v40 = vmul.f32 %v410_v6, %v808_v21 }
 0x3b3   :  { %v421_v8 = vadd.f32 1e-05, %v417_v40 }
 0x3b5   :  { %639 = vrsqrt.f32 %v421_v8  ;;  %vm431_vm5 = vweird.f32 %v421_v8 }
 0x3b6   :  { %v414_v61 = vpop.xlane.xlu0 %413 }
 0x3b7   :  { %v419_v12 = vmul.f32 %v414_v61, %v808_v21 }
 0x3b9   :  { %v423_v15 = vadd.f32 1e-05, %v419_v12 }
 0x3bb   :  { %v640_v17 = vpop.eup %639  ;;  %641 = vrsqrt.f32 %v423_v15  ;;  %vm451_vm7 = vweird.f32 %v423_v15 }
 0x3bc   :  { %v426_v18 = vmul.f32 %v640_v17, %v421_v8  ;;  %vm432_vm3 = vweird.f32 %v640_v17 }
 0x3bd   :  { %vm433_vm6 = vmor %vm431_vm5, %vm432_vm3 }
 0x3be   :  { %v427_v20 = vmul.f32 %v640_v17, %v426_v18  ;;  %v412_v29 = vpop.xlane.xlu2 %411  ;;  %v416_v10 = vpop.xlane.xlu1 %415 }
 0x3bf   :  { %v418_v24 = vmul.f32 %v412_v29, %v808_v21  ;;  %v420_v25 = vmul.f32 %v416_v10, %v808_v21 }
 0x3c0   :  { %v428_v42 = vmul.f32 0.5, %v427_v20  ;;  %v620_v20 = vld [vmem:[%s1015_s7] ss:$0 sm:$0xff] }
 0x3c1   :  { %v642_v27 = vpop.eup %641  ;;  %v422_v28 = vadd.f32 1e-05, %v418_v24  ;;  %v424_v34 = vadd.f32 1e-05, %v420_v25 }
 0x3c2   :  { %v446_v44 = vmul.f32 %v642_v27, %v423_v15  ;;  %v429_v33 = vsub.f32 1.5, %v428_v42  ;;  %vm452_vm4 = vweird.f32 %v642_v27 }
 0x3c3   :  { %643 = vrsqrt.f32 %v422_v28  ;;  %vm453_vm8 = vmor %vm451_vm7, %vm452_vm4  ;;  %vm441_vm11 = vweird.f32 %v422_v28  ;;  %vm461_vm13 = vweird.f32 %v424_v34  ;;  %vm517_vm4 = vcmask 1041409  }
 0x3c4   :  { %v447_v31 = vmul.f32 %v642_v27, %v446_v44  ;;  %645 = vrsqrt.f32 %v424_v34  ;;  %v430_v41 = vmul.f32 %v640_v17, %v429_v33 }
 0x3c6   :  { %v448_v36 = vmul.f32 0.5, %v447_v31  ;;  %v434_v49 = vsel %vm433_vm6, %v640_v17, %v430_v41 }
 0x3c7   :  { %v465_v55 = vmul.f32 %v434_v49, %v973_v52 }
 0x3c8   :  { %v449_v21 = vsub.f32 1.5, %v448_v36 }
 0x3c9   :  { %v644_v38 = vpop.eup %643  ;;  %v473_v62 = vmul.f32 0.02, %v465_v55  ;;  %vm469_vm15 = vcmp.gt.f32.partialorder %v465_v55, 0.0 }
 0x3ca   :  { %v646_v39 = vpop.eup %645  ;;  %v436_v43 = vmul.f32 %v644_v38, %v422_v28  ;;  %v450_v45 = vmul.f32 %v642_v27, %v449_v21  ;;  %vm442_vm9 = vweird.f32 %v644_v38 }
 0x3cb   :  { %v456_v46 = vmul.f32 %v646_v39, %v424_v34  ;;  %vm462_vm10 = vweird.f32 %v646_v39  ;;  %vm443_vm12 = vmor %vm441_vm11, %vm442_vm9  ;;  %v477_v5 = vsel %vm469_vm15, %v465_v55, %v473_v62 }
 0x3cc   :  { %v437_v47 = vmul.f32 %v644_v38, %v436_v43  ;;  %v454_v23 = vsel %vm453_vm8, %v642_v27, %v450_v45  ;;  %vm463_vm14 = vmor %vm461_vm13, %vm462_vm10 }
 0x3cd   :  { %v457_v48 = vmul.f32 %v646_v39, %v456_v46  ;;  %v467_v58 = vmul.f32 %v454_v23, %v978_v57 }
 0x3ce   :  { %v438_v50 = vmul.f32 0.5, %v437_v47 }
 0x3cf   :  { %v458_v51 = vmul.f32 0.5, %v457_v48  ;;  %v475_v3 = vmul.f32 0.02, %v467_v58  ;;  %vm471_vm1 = vcmp.gt.f32.partialorder %v467_v58, 0.0 }
 0x3d0   :  { %v439_v53 = vsub.f32 1.5, %v438_v50 }
 0x3d1   :  { %v459_v56 = vsub.f32 1.5, %v458_v51  ;;  %v479_v7 = vsel %vm471_vm1, %v467_v58, %v475_v3 }
 0x3d2   :  { %v440_v59 = vmul.f32 %v644_v38, %v439_v53 }
 0x3d3   :  { %v460_v35 = vmul.f32 %v646_v39, %v459_v56 }
 0x3d4   :  { %v444_v60 = vsel %vm443_vm12, %v644_v38, %v440_v59 }
 0x3d5   :  { %v466_v2 = vmul.f32 %v444_v60, %v986_v0  ;;  %v464_v54 = vsel %vm463_vm14, %v646_v39, %v460_v35 }
 0x3d6   :  { %v468_v4 = vmul.f32 %v464_v54, %v984_v63 }
 0x3d7   :  { %vm470_vm2 = vcmp.gt.f32.partialorder %v466_v2, 0.0  ;;  %v474_v52 = vmul.f32 0.02, %v466_v2 }
 0x3d8   :  { %vm472_vm3 = vcmp.gt.f32.partialorder %v468_v4, 0.0  ;;  %v476_v57 = vmul.f32 0.02, %v468_v4 }
 0x3d9   :  { %v478_v6 = vsel %vm470_vm2, %v466_v2, %v474_v52 }
 0x3da   :  { %v480_v40 = vsel %vm472_vm3, %v468_v4, %v476_v57  ;;  %v481_v1 = vmax.f32 %v477_v5, %v478_v6 }
 0x3db   :  { %v488_v8 = vmax.f32 %v479_v7, %v480_v40 }
 0x3dc   :  { %v482_v9 = vrot.slane %v481_v1, 4 }
 0x3dd   :  { %v489_v61 = vrot.slane %v488_v8, 4 }
 0x3de   :  { %v483_v11 = vmax.f32 %v481_v1, %v482_v9 }
 0x3df   :  { %v490_v0 = vmax.f32 %v488_v8, %v489_v61 }
 0x3e0   :  { %v484_v12 = vrot.slane %v483_v11, 2 }
 0x3e1   :  { %v491_v13 = vrot.slane %v490_v0, 2 }
 0x3e2   :  { %v485_v14 = vmax.f32 %v483_v11, %v484_v12 }
 0x3e3   :  { %v492_v15 = vmax.f32 %v490_v0, %v491_v13 }
 0x3e4   :  { %v486_v63 = vrot.slane %v485_v14, 1 }
 0x3e5   :  { %v493_v16 = vrot.slane %v492_v15, 1 }
 0x3e6   :  { %v487_v17 = vmax.f32 %v485_v14, %v486_v63 }
 0x3e7   :  { %v494_v18 = vmax.f32 %v492_v15, %v493_v16 }
 0x3e9   :  { %v518_v19 = vsel %vm517_vm4, %v494_v18, %v487_v17 }
 0x3ea   :  { %536 = vmatmul.f32.vlgmr.msrb.gmra.mxu0 %v518_v19 }
 0x467   :  { %v537_v29 = vpop.f32.mrf.mxu0 }
 0x468   :  { %v538_v10 = vadd.f32 %v620_v20, %v537_v29 }
 0x46a   :  { %v540_v22 = vsel %vm142_vm0, %v538_v10, -inf }
 0x46b   :  { %541 = vmax.xlane.f32.xlu2 %v540_v22 }
 0x4de   :  { %v542_v24 = vpop.xlane.xlu2 %541 }
 0x4df   :  { %v543_v25 = vsub.f32 %v538_v10, %v542_v24 }
 0x4e1   :  { %v544_v26 = vmul.f32 1.442695, %v543_v25 }
 0x4e3   :  { %647 = vpow2.f32 %v544_v26 }
 0x4e9   :  { %v648_v27 = vpop.eup %647 }
 0x4ea   :  { %v546_v28 = vsel %vm142_vm0, %v648_v27, 0.0 }
 0x4eb   :  { %547 = vadd.xlane.f32.xlu0 %v546_v28 }
 0x55e   :  { %v548_v34 = vpop.xlane.xlu0 %547 }
 0x55f   :  { %649 = vlog2.f32 %v548_v34 }
 0x565   :  { %v650_v42 = vpop.eup %649 }
 0x566   :  { %v550_v44 = vmul.f32 0.6931472, %v650_v42 }
 0x568   :  { %v551_v30 = vsub.f32 %v543_v25, %v550_v44 }
 0x56a   :  { %552 = vst [vmem:[#allocation7] sm:$0x3] %v551_v30 }
 0x56b   :  { %563 = dma.vmem_to_hbm [thread:$0]  %s559_s15, 32, %s561_s4, [#allocation4]  }
 0x56c   :  { %727 = dma.done.wait [#allocation4], 32  }
 0x56d   :  { %728 = vsyncadd [#allocation4], 4294967264 }
 0x56e   :  { %568 = vsyncpa [#allocation3], 1 }
 0x56f   :  { %569 = vsyncpa [#allocation6], 1 }
 0x570   :  { %570 = vsyncpa [#allocation4], 1 }

</bundles_post_ra>
